<compile_context>
chip_gen: v5e
topology: v5e:2x2
jax: 0.10.0
libtpu: 0.0.40
codegen_flags: <defaults>
</compile_context>

<pallas_src>
import jax
import jax.numpy as jnp
from jax import lax
from jax.experimental import pallas as pl
from jax.experimental.pallas import tpu as pltpu


def mlp_kernel(x_ref, w1_ref, b1_ref, w2_ref, b2_ref, o_ref):
    # fc1 on the MXU, transposed dataflow:
    #   h_T[h, t] = sum_d w1[h, d] * x[t, d]   -> (H, TB), f32 accumulation.
    h = lax.dot_general(
        w1_ref[...], x_ref[...],
        dimension_numbers=(((1,), (1,)), ((), ())),
        preferred_element_type=jnp.float32)
    h = h + b1_ref[...]               # (H, 1) bias broadcast along lanes
    h = jnp.maximum(h, 0.0)           # ReLU on full-lane vregs
    # Second layer has N=1: keep it off the MXU. VPU multiply by the (H, 1)
    # weight column + sublane reduction over the hidden axis -> (1, TB).
    y = jnp.sum(h * w2_ref[...], axis=0, keepdims=True)
    o_ref[...] = (y + b2_ref[0, 0]).astype(o_ref.dtype)


def simple_fc_net(x, w1, b1, w2, b2, *, tb=None):
    """Fused forward pass of SimpleFCNet: out(relu(fc1(x))).

    x:  (B, D) float32 or bfloat16 (used as-is; no wrapper-side cast/pad/copy)
    w1: (H, D)  -- fc1.weight (PyTorch layout)
    b1: (H,)    -- fc1.bias
    w2: (1, H)  -- out.weight
    b2: (1,)    -- out.bias
    returns (B, 1) float32
    """
    B, D = x.shape
    H = w1.shape[0]

    # Resident params: tiny one-time loads, so reshaping/casting them in the
    # wrapper is free relative to the streamed x.
    w1 = jnp.asarray(w1).reshape(H, D).astype(x.dtype)   # match MXU input dtype
    b1 = jnp.asarray(b1, jnp.float32).reshape(H, 1)
    w2c = jnp.asarray(w2, jnp.float32).reshape(H, 1)
    b2 = jnp.asarray(b2, jnp.float32).reshape(1, 1)

    # Batch tile: large (default 8192 rows) to amortize per-grid-step overhead
    # against the small per-row footprint (D=16). When tiling, keep the tile a
    # multiple of 128 so the (1, tb) output block is lane-aligned and the
    # (tb, D) input block is sublane-aligned; a small batch is one full block.
    if tb is None:
        tb = 8192
    tb = min(tb, B)
    if tb < B:
        tb = max(128, (tb // 128) * 128)

    grid = (pl.cdiv(B, tb),)

    cost = pl.CostEstimate(
        flops=2 * B * D * H + 4 * B * H,
        transcendentals=0,
        bytes_accessed=B * D * x.dtype.itemsize + B * 4
        + H * D * w1.dtype.itemsize + (2 * H + 1) * 4,
    )

    out = pl.pallas_call(
        mlp_kernel,
        out_shape=jax.ShapeDtypeStruct((1, B), jnp.float32),
        grid=grid,
        in_specs=[
            pl.BlockSpec((tb, D), lambda i: (i, 0)),            # x: streamed per batch tile
            pl.BlockSpec((H, D), lambda i: (0, 0)),             # w1: VMEM-resident
            pl.BlockSpec((H, 1), lambda i: (0, 0)),             # b1 column: VMEM-resident
            pl.BlockSpec((H, 1), lambda i: (0, 0)),             # w2 column: VMEM-resident
            pl.BlockSpec((1, 1), lambda i: (0, 0),
                         memory_space=pltpu.MemorySpace.SMEM),  # b2: scalar in SMEM
        ],
        out_specs=pl.BlockSpec((1, tb), lambda i: (0, i)),      # lane-dense output row
        compiler_params=pltpu.CompilerParams(
            dimension_semantics=("parallel",)),
        cost_estimate=cost,
    )(x, w1, b1, w2c, b2)
    return out.reshape(B, 1)


if __name__ == "__main__":
    # Small shapes consistent with the module: batch=8, input_dim=16, hidden=32.
    B, D, H = 8, 16, 32

    key = jax.random.PRNGKey(0)
    kx, k1, k2, k3, k4 = jax.random.split(key, 5)

    x = jax.random.normal(kx, (B, D), dtype=jnp.float32)
    w1 = jax.random.normal(k1, (H, D), dtype=jnp.float32) * 0.1   # fc1.weight
    b1 = jax.random.normal(k2, (H,), dtype=jnp.float32) * 0.1     # fc1.bias
    w2 = jax.random.normal(k3, (1, H), dtype=jnp.float32) * 0.1   # out.weight
    b2 = jax.random.normal(k4, (1,), dtype=jnp.float32) * 0.1     # out.bias

    def ref_fwd(xx):
        return jnp.maximum(xx @ w1.T + b1, 0.0) @ w2.T + b2

    # Small-batch (single tile) check, f32.
    out = jax.block_until_ready(simple_fc_net(x, w1, b1, w2, b2))
    assert out.shape == (B, 1)
    assert jnp.allclose(out, ref_fwd(x), atol=1e-5, rtol=1e-5)

    # Multi-tile pipelined path with a non-divisible tail block (no jnp.pad).
    B2 = 20000
    x2 = jax.random.normal(jax.random.PRNGKey(1), (B2, D), dtype=jnp.float32)
    out2 = jax.block_until_ready(simple_fc_net(x2, w1, b1, w2, b2, tb=8192))
    assert out2.shape == (B2, 1)
    assert jnp.allclose(out2, ref_fwd(x2), atol=1e-4, rtol=1e-4)

    # bf16 x supplied by the producer (no wrapper-side cast of the stream);
    # f32 accumulation, loose tolerance vs the f32 reference.
    x3 = x2.astype(jnp.bfloat16)
    out3 = jax.block_until_ready(simple_fc_net(x3, w1, b1, w2, b2, tb=8192))
    assert jnp.allclose(out3, ref_fwd(x2), atol=5e-2, rtol=5e-2)

    print("KERNEL_OK")
</pallas_src>

<mosaic_0001>
module attributes {stable_mosaic.version = 11 : i64} {
  func.func @mlp_kernel(%arg0: i32, %arg1: memref<8x16xf32, #tpu.memory_space<vmem>>, %arg2: memref<32x16xf32, #tpu.memory_space<vmem>>, %arg3: memref<32x1xf32, #tpu.memory_space<vmem>>, %arg4: memref<32x1xf32, #tpu.memory_space<vmem>>, %arg5: memref<1x1xf32, #tpu.memory_space<smem>>, %arg6: memref<1x8xf32, #tpu.memory_space<vmem>>) attributes {dimension_semantics = [#tpu.dimension_semantics<parallel>], iteration_bounds = array<i64: 1>, scalar_prefetch = 0 : i64, scratch_operands = 0 : i64, tpu.core_type = #tpu.core_type<tc>, window_params = [{transform_indices = @transform_0, window_bounds = array<i64: 8, 16>}, {pipeline_mode = #tpu.pipeline_mode<synchronous>, transform_indices = @transform_1, window_bounds = array<i64: 32, 16>}, {pipeline_mode = #tpu.pipeline_mode<synchronous>, transform_indices = @transform_2, window_bounds = array<i64: 32, 1>}, {pipeline_mode = #tpu.pipeline_mode<synchronous>, transform_indices = @transform_3, window_bounds = array<i64: 32, 1>}, {transform_indices = @transform_4, window_bounds = array<i64: 1, 1>}, {transform_indices = @transform_5, window_bounds = array<i64: 1, 8>}]} {
    %c0 = arith.constant 0 : index
    %c0_0 = arith.constant 0 : index
    %0 = vector.load %arg2[%c0, %c0_0] : memref<32x16xf32, #tpu.memory_space<vmem>>, vector<32x16xf32>
    %c0_1 = arith.constant 0 : index
    %c0_2 = arith.constant 0 : index
    %1 = vector.load %arg1[%c0_1, %c0_2] : memref<8x16xf32, #tpu.memory_space<vmem>>, vector<8x16xf32>
    %cst = arith.constant dense<0.000000e+00> : vector<32x8xf32>
    %2 = tpu.matmul %0, %1, %cst {dimension_numbers = #tpu.dot_dimension_numbers<[1], [1], [0], [0], [0, 0, 1, 0], [], []>} : vector<32x16xf32>, vector<8x16xf32>, vector<32x8xf32> -> vector<32x8xf32>
    %c0_3 = arith.constant 0 : index
    %c0_4 = arith.constant 0 : index
    %3 = vector.load %arg3[%c0_3, %c0_4] : memref<32x1xf32, #tpu.memory_space<vmem>>, vector<32x1xf32>
    %4 = vector.broadcast %3 : vector<32x1xf32> to vector<32x8xf32>
    %5 = arith.addf %2, %4 : vector<32x8xf32>
    %cst_5 = arith.constant 0.000000e+00 : f32
    %6 = vector.broadcast %cst_5 : f32 to vector<32x8xf32>
    %7 = arith.maximumf %5, %6 : vector<32x8xf32>
    %c0_6 = arith.constant 0 : index
    %c0_7 = arith.constant 0 : index
    %8 = vector.load %arg4[%c0_6, %c0_7] : memref<32x1xf32, #tpu.memory_space<vmem>>, vector<32x1xf32>
    %9 = vector.broadcast %8 : vector<32x1xf32> to vector<32x8xf32>
    %10 = arith.mulf %7, %9 : vector<32x8xf32>
    %cst_8 = arith.constant dense<0.000000e+00> : vector<8xf32>
    %11 = vector.multi_reduction <add>, %10, %cst_8 [0] : vector<32x8xf32> to vector<8xf32>
    %12 = vector.shape_cast %11 : vector<8xf32> to vector<1x8xf32>
    %c0_9 = arith.constant 0 : index
    %c0_10 = arith.constant 0 : index
    %13 = memref.load %arg5[%c0_9, %c0_10] : memref<1x1xf32, #tpu.memory_space<smem>>
    %14 = vector.broadcast %13 : f32 to vector<1x8xf32>
    %15 = arith.addf %12, %14 : vector<1x8xf32>
    %c0_11 = arith.constant 0 : index
    %c0_12 = arith.constant 0 : index
    %16 = vector.load %arg6[%c0_11, %c0_12] : memref<1x8xf32, #tpu.memory_space<vmem>>, vector<1x8xf32>
    tpu.vector_store %arg6[%c0_11, %c0_12], %15 {strides = array<i32>} : memref<1x8xf32, #tpu.memory_space<vmem>>, vector<1x8xf32>,
    return
  }
  func.func @transform_0(%arg0: i32) -> (i32, i32) {
    %c0_i32 = arith.constant 0 : i32
    %c0_i32_0 = arith.constant 0 : i32
    return %arg0, %c0_i32 : i32, i32
  }
  func.func @transform_1(%arg0: i32) -> (i32, i32) {
    %c0_i32 = arith.constant 0 : i32
    %c0_i32_0 = arith.constant 0 : i32
    %c0_i32_1 = arith.constant 0 : i32
    return %c0_i32, %c0_i32_0 : i32, i32
  }
  func.func @transform_2(%arg0: i32) -> (i32, i32) {
    %c0_i32 = arith.constant 0 : i32
    %c0_i32_0 = arith.constant 0 : i32
    %c0_i32_1 = arith.constant 0 : i32
    return %c0_i32, %c0_i32_0 : i32, i32
  }
  func.func @transform_3(%arg0: i32) -> (i32, i32) {
    %c0_i32 = arith.constant 0 : i32
    %c0_i32_0 = arith.constant 0 : i32
    %c0_i32_1 = arith.constant 0 : i32
    return %c0_i32, %c0_i32_0 : i32, i32
  }
  func.func @transform_4(%arg0: i32) -> (i32, i32) {
    %c0_i32 = arith.constant 0 : i32
    %c0_i32_0 = arith.constant 0 : i32
    %c0_i32_1 = arith.constant 0 : i32
    return %c0_i32, %c0_i32_0 : i32, i32
  }
  func.func @transform_5(%arg0: i32) -> (i32, i32) {
    %c0_i32 = arith.constant 0 : i32
    %c0_i32_0 = arith.constant 0 : i32
    return %c0_i32, %arg0 : i32, i32
  }
}

</mosaic_0001>

<bundles_post_ra>
// kernel: tpu_custom_call.1
= control target key start
LH: loop header
LB: loop body
LE: loop exit
PB: predicated region body
PF: predicated region fallthrough
CT: control target
= control target key end

     0   :  { %vm51_vm0 = vcmask 130048   ;;  %v202_v1 = vmov 0   ;;  %s291_s0 = inlined_call_operand.vmem [shape: f32[8,16], index: 0, kind: input, shape index: {}]   ;;  %s292_s1 = inlined_call_operand.vmem [shape: f32[32,16], index: 1, kind: input, shape index: {}]   ;;  %s293_s2 = inlined_call_operand.vmem [shape: f32[32,1], index: 2, kind: input, shape index: {}]   ;;  %s294_s3 = inlined_call_operand.vmem [shape: f32[32,1], index: 3, kind: input, shape index: {}]   ;;  %s295_s4 = inlined_call_operand.<no memory space> [shape: f32[1,1], index: 4, kind: input, shape index: {}]   ;;  %s296_s5 = inlined_call_operand.hbm [shape: f32[1,8], index: 5, kind: output, shape index: {}]  }
   0x1   :  { %v26_v0 = vld [vmem:[%s291_s0] sm:$0xff]  ;;  %174 = vset.pattern.permute.xlu1 %v202_v1  ;;  %173 = vset.pattern.permute.xlu0 %v202_v1  ;;  %v29_v2 = vld [vmem:[%s293_s2 + $0x10] sm:$0xff]  ;;  %v23_v5 = vld [vmem:[%s292_s1 + $0x8] sm:$0xff] }
   0x2   :  { %v27_v3 = vld [vmem:[%s293_s2] sm:$0xff]  ;;  %163 = vmatpush.xpose.msk.msra.mxu0 %vm51_vm0, %v26_v0  ;;  %168 = vmatpush.xpose.msk.msra.mxu1 %vm51_vm0, %v26_v0  ;;  %v24_v6 = vld [vmem:[%s292_s1 + $0x10] sm:$0xff]  ;;  %v25_v7 = vld [vmem:[%s292_s1 + $0x18] sm:$0xff] }
   0x3   :  { %v22_v4 = vld [vmem:[%s292_s1] sm:$0xff]  ;;  %169 = vmatpush.xpose.msk.msra.mxu2 %vm51_vm0, %v26_v0  ;;  %170 = vmatpush.xpose.msk.msra.mxu3 %vm51_vm0, %v26_v0 }
   0x4   :  { %43 = vperm.xlu1 %174, %v29_v2   ;;  %33 = vperm.xlu0 %173, %v27_v3  }
   0x5   :  { %11 = vsyncpa [#allocation4], 0  ;;  %164 = vmatmul.msk.f32.vlgmr.msra.gmra.mxu0 %vm51_vm0, %v22_v4  ;;  %165 = vmatmul.msk.f32.vlgmr.msra.gmra.mxu1 %vm51_vm0, %v23_v5  ;;  %v100_v8 = vld [vmem:[%s294_s3] sm:$0xff]  ;;  %v30_v9 = vld [vmem:[%s293_s2 + $0x18] sm:$0xff]  ;;  %vm128_vm1 = vcmask 64512   ;;  %v143_v50 = vstv %s295_s4  ;;  %s203_s17 = smov [#allocation3]  }
   0x6   :  { %166 = vmatmul.msk.f32.vlgmr.msra.gmra.mxu2 %vm51_vm0, %v24_v6  ;;  %167 = vmatmul.msk.f32.vlgmr.msra.gmra.mxu3 %vm51_vm0, %v25_v7  ;;  %v28_v10 = vld [vmem:[%s293_s2 + $0x8] sm:$0xff]  ;;  %v103_v12 = vld [vmem:[%s294_s3 + $0x18] sm:$0xff]  ;;  %v102_v13 = vld [vmem:[%s294_s3 + $0x10] sm:$0xff]  ;;  %s152_s18 = sshll.u32 %s203_s17, 4  ;;  %s154_s21 = sshll.u32 %s296_s5, 4  ;;  %vm145_vm2 = vcmask 57344   ;;  %s153_s18 = int_to_ptr.vmem [resolvable:$true] %s152_s18  ;;  %s155_s21 = int_to_ptr.hbm [resolvable:$true] %s154_s21 }
   0x7   :  { %175 = vset.pattern.permute.xlu2 %v202_v1  ;;  %v101_v11 = vld [vmem:[%s294_s3 + $0x8] sm:$0xff] }
   0x8   :  { %106 = vperm.xlu2 %175, %v100_v8  }
   0xc   :  { %48 = vperm.xlu1 %174, %v30_v9   ;;  %38 = vperm.xlu0 %173, %v28_v10  }
  0x10   :  { %111 = vperm.xlu2 %175, %v101_v11  }
  0x14   :  { %121 = vperm.xlu1 %174, %v103_v12   ;;  %116 = vperm.xlu0 %173, %v102_v13  }
  0x62   :  { %v107_v16 = vpop.permute.xlu2 %106 }
  0x6a   :  { %v112_v25 = vpop.permute.xlu2 %111 }
  0x76   :  { %v34_v14 = vpop.permute.xlu0 %33  ;;  %v44_v15 = vpop.permute.xlu1 %43 }
  0x7e   :  { %v39_v17 = vpop.permute.xlu0 %38  ;;  %v49_v20 = vpop.permute.xlu1 %48 }
  0x82   :  { %v84_v18 = vpop.f32.mrf.mxu0  ;;  %v87_v19 = vpop.f32.mrf.mxu1 }
  0x83   :  { %v85_v21 = vadd.f32 %v84_v18, %v34_v14  ;;  %v88_v22 = vadd.f32 %v87_v19, %v39_v17 }
  0x85   :  { %v96_v23 = vmax.f32 %v85_v21, 0.0  ;;  %v97_v24 = vmax.f32 %v88_v22, 0.0 }
  0x86   :  { %v122_v36 = vpop.permute.xlu1 %121  ;;  %v117_v37 = vpop.permute.xlu0 %116 }
  0x87   :  { %v124_v26 = vmul.f32 %v107_v16, %v96_v23  ;;  %v125_v27 = vmul.f32 %v112_v25, %v97_v24 }
  0x89   :  { %v90_v28 = vpop.f32.mrf.mxu2  ;;  %v93_v29 = vpop.f32.mrf.mxu3  ;;  %v129_v32 = vsel %vm128_vm1, %v124_v26, 0.0  ;;  %v130_v33 = vsel %vm128_vm1, %v125_v27, 0.0 }
  0x8a   :  { %v91_v30 = vadd.f32 %v90_v28, %v44_v15  ;;  %v94_v31 = vadd.f32 %v93_v29, %v49_v20  ;;  %v131_v40 = vadd.f32 %v130_v33, %v129_v32 }
  0x8c   :  { %v98_v34 = vmax.f32 %v91_v30, 0.0  ;;  %v99_v35 = vmax.f32 %v94_v31, 0.0 }
  0x8e   :  { %v126_v38 = vmul.f32 %v117_v37, %v98_v34  ;;  %v127_v39 = vmul.f32 %v122_v36, %v99_v35 }
  0x90   :  { %v132_v41 = vsel %vm128_vm1, %v126_v38, 0.0  ;;  %v134_v43 = vsel %vm128_vm1, %v127_v39, 0.0 }
  0x91   :  { %v133_v42 = vadd.f32 %v132_v41, %v131_v40 }
  0x93   :  { %v135_v44 = vadd.f32 %v134_v43, %v133_v42 }
  0x95   :  { %v136_v45 = vrot.slane %v135_v44, 4 }
  0x97   :  { %v137_v46 = vadd.f32 %v136_v45, %v135_v44 }
  0x99   :  { %v138_v47 = vrot.slane %v137_v46, 2 }
  0x9b   :  { %v139_v48 = vadd.f32 %v138_v47, %v137_v46 }
  0x9d   :  { %v140_v49 = vrot.slane %v139_v48, 1 }
  0x9f   :  { %v141_v51 = vadd.f32 %v140_v49, %v139_v48 }
  0xa1   :  { %v144_v52 = vadd.f32 %v143_v50, %v141_v51 }
  0xa3   :  { %146 = vst.msk [vmem:[#allocation3] sm:$0x1] %vm145_vm2, %v144_v52 }
  0xa4   :  { %157 = dma.vmem_to_hbm [thread:$0]  %s153_s18, 16, %s155_s21, [#allocation4]  }
  0xa5   :  { %200 = dma.done.wait [#allocation4], 16  }
  0xa6   :  { %201 = vsyncadd [#allocation4], 4294967280 }
  0xa7   :  { %162 = vsyncpa [#allocation4], 1 }

</bundles_post_ra>
